<compile_context>
chip_gen: v5e
topology: v5e:2x2
jax: 0.10.0
libtpu: 0.0.40
codegen_flags: <defaults>
</compile_context>

<pallas_src>
import math

import jax
import jax.numpy as jnp
from jax.experimental import pallas as pl
from jax.experimental.pallas import tpu as pltpu

LANE = 128
SUBLANE = 8
BN_EPS = 1e-5
# MXU operand dtype (accumulation is always float32).
MATMUL_DTYPE = jnp.bfloat16


def _round_up(n, m):
    return ((n + m - 1) // m) * m


def _pad2(a, rows, cols):
    r, c = a.shape
    return jnp.pad(a, ((0, rows - r), (0, cols - c)))


# ---------------------------------------------------------------------------
# Fused VAE forward kernel (single pallas_call, everything VMEM-resident)
# ---------------------------------------------------------------------------

def _make_vae_kernel(enc_kinds, dec_kinds, latent_pad, batch_real, batch_pad):
    """Builds the fused kernel body for a static layer layout."""
    n_enc = len(enc_kinds)
    n_dec = len(dec_kinds)

    def kernel(x_ref, eps_ref, *refs):
        xhat_ref, mu_ref, logvar_ref = refs[-3:]
        p = refs[:-3]
        enc_w = p[:n_enc]
        enc_vec = p[n_enc]
        w_head = p[n_enc + 1]
        b_head = p[n_enc + 2]
        dec_w = p[n_enc + 3:n_enc + 3 + n_dec]
        dec_vec = p[n_enc + 3 + n_dec]

        # Row mask so zero-padded batch rows are excluded from BN statistics.
        if batch_pad != batch_real:
            rows = jax.lax.broadcasted_iota(jnp.int32, (batch_pad, 1), 0)
            bn_mask = (rows < batch_real).astype(jnp.float32)
        else:
            bn_mask = None
        inv_n = jnp.float32(1.0 / batch_real)

        def dense(h, w_ref, bias):
            # MXU matmul with f32 accumulation; bias add stays f32 on the VPU.
            return jnp.dot(h.astype(w_ref.dtype), w_ref[...],
                           preferred_element_type=jnp.float32) + bias

        def run_mlp(kinds, w_refs, vec_ref, h):
            row = 0
            for layer, kind in enumerate(kinds):
                bias = vec_ref[pl.ds(row, 1), :]
                row += 1
                y = dense(h, w_refs[layer], bias)
                if kind == "bn_relu":
                    gamma = vec_ref[pl.ds(row, 1), :]
                    beta = vec_ref[pl.ds(row + 1, 1), :]
                    row += 2
                    # Training-mode BatchNorm1d (batch stats, biased variance)
                    # over the real batch rows only.
                    if bn_mask is None:
                        mean = jnp.sum(y, axis=0, keepdims=True) * inv_n
                        var = jnp.sum(jnp.square(y - mean), axis=0,
                                      keepdims=True) * inv_n
                    else:
                        mean = jnp.sum(y * bn_mask, axis=0,
                                       keepdims=True) * inv_n
                        var = jnp.sum(jnp.square((y - mean) * bn_mask), axis=0,
                                      keepdims=True) * inv_n
                    # Fused scale/shift FMA epilogue.
                    scale = gamma * jax.lax.rsqrt(var + BN_EPS)
                    shift = beta - mean * scale
                    h = jnp.maximum(y * scale + shift, 0.0)
                elif kind == "relu":
                    h = jnp.maximum(y, 0.0)
                else:  # "linear"
                    h = y
            return h

        # ---- encoder --------------------------------------------------------
        h = run_mlp(enc_kinds, enc_w, enc_vec, x_ref[...])

        # ---- fused mu / logvar head (one wide matmul) ------------------------
        head = dense(h, w_head, b_head[...])          # (B, 2 * latent_pad)
        mu = head[:, :latent_pad]
        logvar = head[:, latent_pad:]

        # ---- reparameterize (eps from host; zero in pad lanes/rows) ----------
        z = mu + eps_ref[...] * jnp.exp(0.5 * logvar)

        # ---- decoder ----------------------------------------------------------
        x_hat = run_mlp(dec_kinds, dec_w, dec_vec, z)

        xhat_ref[...] = x_hat
        mu_ref[...] = mu
        logvar_ref[...] = logvar

    return kernel


# ---------------------------------------------------------------------------
# Parameter init (PyTorch-style uniform bounds), zero-padded to 128 lanes,
# with all small per-layer vectors packed into one array per network.
# ---------------------------------------------------------------------------

def _init_linear(key, din, dout, din_pad, dout_pad):
    kw, kb = jax.random.split(key)
    bound = 1.0 / float(din) ** 0.5
    w = jax.random.uniform(kw, (din, dout), jnp.float32, -bound, bound)
    b = jax.random.uniform(kb, (1, dout), jnp.float32, -bound, bound)
    w = _pad2(w, din_pad, dout_pad).astype(MATMUL_DTYPE)  # zero-padded rows/cols
    b = _pad2(b, 1, dout_pad)                             # f32 bias row
    return w, b


def _init_mlp(key, din, dout, num_layers, use_bn, din_pad, dout_pad):
    kinds, weights, vec_rows = [], [], []
    keys = jax.random.split(key, num_layers)
    d, dp = din, din_pad
    for i in range(num_layers - 1):
        w, b = _init_linear(keys[i], d, dout, dp, dout_pad)
        weights.append(w)
        vec_rows.append(b)
        if use_bn:
            vec_rows.append(_pad2(jnp.ones((1, dout), jnp.float32), 1, dout_pad))
            vec_rows.append(jnp.zeros((1, dout_pad), jnp.float32))
            kinds.append("bn_relu")
        else:
            kinds.append("relu")
        d, dp = dout, dout_pad
    w, b = _init_linear(keys[-1], d, dout, dp, dout_pad)
    weights.append(w)
    vec_rows.append(b)
    kinds.append("linear")
    vecs = jnp.concatenate(vec_rows, axis=0)       # (n_vecs, dout_pad), one tile-ish
    return kinds, weights, vecs


def init_vae(key, input_dim, latent_dim, num_mlp_layers, use_bn=True):
    dp = _round_up(input_dim, LANE)
    lp = _round_up(latent_dim, LANE)
    k_enc, k_mu, k_lv, k_dec = jax.random.split(key, 4)

    enc_kinds, enc_w, enc_vecs = _init_mlp(
        k_enc, input_dim, latent_dim, num_mlp_layers, use_bn, dp, lp)

    # fc_mu / fc_logvar fused into one (lp, 2*lp) head.
    w_mu, b_mu = _init_linear(k_mu, latent_dim, latent_dim, lp, lp)
    w_lv, b_lv = _init_linear(k_lv, latent_dim, latent_dim, lp, lp)
    w_head = jnp.concatenate([w_mu, w_lv], axis=1)
    b_head = jnp.concatenate([b_mu, b_lv], axis=1)

    dec_kinds, dec_w, dec_vecs = _init_mlp(
        k_dec, latent_dim, input_dim, num_mlp_layers, use_bn, lp, dp)

    flat = list(enc_w) + [enc_vecs, w_head, b_head] + list(dec_w) + [dec_vecs]
    return {
        "dims": (input_dim, latent_dim, dp, lp),
        "enc_kinds": enc_kinds,
        "dec_kinds": dec_kinds,
        "flat_params": flat,
    }


# ---------------------------------------------------------------------------
# Forward: one fused pallas_call
# ---------------------------------------------------------------------------

def _tpu_compiler_params(vmem_limit_bytes):
    cls = getattr(pltpu, "CompilerParams", None) or getattr(
        pltpu, "TPUCompilerParams", None)
    if cls is None:
        return None
    try:
        return cls(vmem_limit_bytes=int(vmem_limit_bytes))
    except Exception:
        return None


def vae_forward(params, x, eps_key):
    input_dim, latent_dim, dp, lp = params["dims"]
    batch = x.shape[0]
    bp = _round_up(batch, SUBLANE)
    flat = params["flat_params"]

    x_pad = _pad2(x.astype(jnp.float32), bp, dp)
    # eps ~ N(0,1) only in the real (batch, latent_dim) block; pad lanes/rows
    # are zero so no noise leaks through padded weights.
    eps = jax.random.normal(eps_key, (batch, latent_dim), jnp.float32)
    eps_pad = _pad2(eps, bp, lp)

    kernel = _make_vae_kernel(params["enc_kinds"], params["dec_kinds"],
                              lp, batch, bp)

    out_shape = (
        jax.ShapeDtypeStruct((bp, dp), jnp.float32),   # x_hat  (padded)
        jax.ShapeDtypeStruct((bp, lp), jnp.float32),   # mu     (padded)
        jax.ShapeDtypeStruct((bp, lp), jnp.float32),   # logvar (padded)
    )
    vspec = pl.BlockSpec(memory_space=pltpu.MemorySpace.VMEM)
    in_specs = [vspec] * (2 + len(flat))
    out_specs = (vspec, vspec, vspec)

    # Size the scoped-VMEM request from the real footprint; cap at 64 MiB so a
    # configuration that fits v5e/v6e never over-asks v7x.
    footprint = sum(int(a.size) * a.dtype.itemsize
                    for a in ([x_pad, eps_pad] + list(flat)))
    footprint += sum(math.prod(s.shape) * jnp.dtype(s.dtype).itemsize
                     for s in out_shape)
    vmem_limit = min(64 << 20, max(32 << 20, 4 * footprint))

    x_hat_p, mu_p, logvar_p = pl.pallas_call(
        kernel,
        out_shape=out_shape,
        in_specs=in_specs,
        out_specs=out_specs,
        compiler_params=_tpu_compiler_params(vmem_limit),
    )(x_pad, eps_pad, *flat)

    return (x_hat_p[:batch, :input_dim],
            mu_p[:batch, :latent_dim],
            logvar_p[:batch, :latent_dim])


# ---------------------------------------------------------------------------

if __name__ == "__main__":
    batch = 8
    input_dim = 32
    latent_dim = 16
    num_mlp_layers = 2

    root = jax.random.PRNGKey(0)
    k_params, k_x, k_eps = jax.random.split(root, 3)

    params = init_vae(k_params, input_dim, latent_dim, num_mlp_layers, use_bn=True)
    x = jax.random.normal(k_x, (batch, input_dim), jnp.float32)

    x_hat, mu, logvar = vae_forward(params, x, k_eps)
    jax.block_until_ready((x_hat, mu, logvar))

    assert x_hat.shape == (batch, input_dim)
    assert mu.shape == (batch, latent_dim)
    assert logvar.shape == (batch, latent_dim)
    assert bool(jnp.all(jnp.isfinite(x_hat)))
    assert bool(jnp.all(jnp.isfinite(mu)))
    assert bool(jnp.all(jnp.isfinite(logvar)))
    print("KERNEL_OK")
</pallas_src>

<mosaic_0001>
module attributes {stable_mosaic.version = 11 : i64} {
  func.func @kernel(%arg0: memref<8x128xf32, #tpu.memory_space<vmem>>, %arg1: memref<8x128xf32, #tpu.memory_space<vmem>>, %arg2: memref<128x128xbf16, #tpu.memory_space<vmem>>, %arg3: memref<128x128xbf16, #tpu.memory_space<vmem>>, %arg4: memref<4x128xf32, #tpu.memory_space<vmem>>, %arg5: memref<128x256xbf16, #tpu.memory_space<vmem>>, %arg6: memref<1x256xf32, #tpu.memory_space<vmem>>, %arg7: memref<128x128xbf16, #tpu.memory_space<vmem>>, %arg8: memref<128x128xbf16, #tpu.memory_space<vmem>>, %arg9: memref<4x128xf32, #tpu.memory_space<vmem>>, %arg10: memref<8x128xf32, #tpu.memory_space<vmem>>, %arg11: memref<8x128xf32, #tpu.memory_space<vmem>>, %arg12: memref<8x128xf32, #tpu.memory_space<vmem>>) attributes {dimension_semantics = [], scalar_prefetch = 0 : i64, scratch_operands = 0 : i64, tpu.core_type = #tpu.core_type<tc>} {
    %c0 = arith.constant 0 : index
    %c0_0 = arith.constant 0 : index
    %0 = vector.load %arg0[%c0, %c0_0] : memref<8x128xf32, #tpu.memory_space<vmem>>, vector<8x128xf32>
    %c0_1 = arith.constant 0 : index
    %c0_2 = arith.constant 0 : index
    %1 = vector.load %arg4[%c0_1, %c0_2] : memref<4x128xf32, #tpu.memory_space<vmem>>, vector<1x128xf32>
    %2 = arith.truncf %0 : vector<8x128xf32> to vector<8x128xbf16>
    %c0_3 = arith.constant 0 : index
    %c0_4 = arith.constant 0 : index
    %3 = vector.load %arg2[%c0_3, %c0_4] : memref<128x128xbf16, #tpu.memory_space<vmem>>, vector<128x128xbf16>
    %cst = arith.constant dense<0.000000e+00> : vector<8x128xf32>
    %4 = tpu.matmul %2, %3, %cst {dimension_numbers = #tpu.dot_dimension_numbers<[1], [0], [0], [1], [0, 0, 1, 1], [], []>} : vector<8x128xbf16>, vector<128x128xbf16>, vector<8x128xf32> -> vector<8x128xf32>
    %5 = vector.broadcast %1 : vector<1x128xf32> to vector<8x128xf32>
    %6 = arith.addf %4, %5 : vector<8x128xf32>
    %c1 = arith.constant 1 : index
    %c0_5 = arith.constant 0 : index
    %7 = vector.load %arg4[%c1, %c0_5] : memref<4x128xf32, #tpu.memory_space<vmem>>, vector<1x128xf32>
    %c2 = arith.constant 2 : index
    %c0_6 = arith.constant 0 : index
    %8 = vector.load %arg4[%c2, %c0_6] : memref<4x128xf32, #tpu.memory_space<vmem>>, vector<1x128xf32>
    %cst_7 = arith.constant dense<0.000000e+00> : vector<128xf32>
    %9 = vector.multi_reduction <add>, %6, %cst_7 [0] : vector<8x128xf32> to vector<128xf32>
    %10 = vector.shape_cast %9 : vector<128xf32> to vector<1x128xf32>
    %cst_8 = arith.constant 1.250000e-01 : f32
    %11 = vector.broadcast %cst_8 : f32 to vector<1x128xf32>
    %12 = arith.mulf %10, %11 : vector<1x128xf32>
    %13 = vector.broadcast %12 : vector<1x128xf32> to vector<8x128xf32>
    %14 = arith.subf %6, %13 : vector<8x128xf32>
    %15 = arith.mulf %14, %14 : vector<8x128xf32>
    %cst_9 = arith.constant dense<0.000000e+00> : vector<128xf32>
    %16 = vector.multi_reduction <add>, %15, %cst_9 [0] : vector<8x128xf32> to vector<128xf32>
    %17 = vector.shape_cast %16 : vector<128xf32> to vector<1x128xf32>
    %cst_10 = arith.constant 1.250000e-01 : f32
    %18 = vector.broadcast %cst_10 : f32 to vector<1x128xf32>
    %19 = arith.mulf %17, %18 : vector<1x128xf32>
    %cst_11 = arith.constant 9.99999974E-6 : f32
    %20 = vector.broadcast %cst_11 : f32 to vector<1x128xf32>
    %21 = arith.addf %19, %20 : vector<1x128xf32>
    %22 = math.rsqrt %21 : vector<1x128xf32>
    %23 = arith.mulf %7, %22 : vector<1x128xf32>
    %24 = arith.mulf %12, %23 : vector<1x128xf32>
    %25 = arith.subf %8, %24 : vector<1x128xf32>
    %26 = vector.broadcast %23 : vector<1x128xf32> to vector<8x128xf32>
    %27 = arith.mulf %6, %26 : vector<8x128xf32>
    %28 = vector.broadcast %25 : vector<1x128xf32> to vector<8x128xf32>
    %29 = arith.addf %27, %28 : vector<8x128xf32>
    %cst_12 = arith.constant 0.000000e+00 : f32
    %30 = vector.broadcast %cst_12 : f32 to vector<8x128xf32>
    %31 = arith.maximumf %29, %30 : vector<8x128xf32>
    %c3 = arith.constant 3 : index
    %c0_13 = arith.constant 0 : index
    %32 = vector.load %arg4[%c3, %c0_13] : memref<4x128xf32, #tpu.memory_space<vmem>>, vector<1x128xf32>
    %33 = arith.truncf %31 : vector<8x128xf32> to vector<8x128xbf16>
    %c0_14 = arith.constant 0 : index
    %c0_15 = arith.constant 0 : index
    %34 = vector.load %arg3[%c0_14, %c0_15] : memref<128x128xbf16, #tpu.memory_space<vmem>>, vector<128x128xbf16>
    %cst_16 = arith.constant dense<0.000000e+00> : vector<8x128xf32>
    %35 = tpu.matmul %33, %34, %cst_16 {dimension_numbers = #tpu.dot_dimension_numbers<[1], [0], [0], [1], [0, 0, 1, 1], [], []>} : vector<8x128xbf16>, vector<128x128xbf16>, vector<8x128xf32> -> vector<8x128xf32>
    %36 = vector.broadcast %32 : vector<1x128xf32> to vector<8x128xf32>
    %37 = arith.addf %35, %36 : vector<8x128xf32>
    %c0_17 = arith.constant 0 : index
    %c0_18 = arith.constant 0 : index
    %38 = vector.load %arg6[%c0_17, %c0_18] : memref<1x256xf32, #tpu.memory_space<vmem>>, vector<1x256xf32>
    %39 = arith.truncf %37 : vector<8x128xf32> to vector<8x128xbf16>
    %c0_19 = arith.constant 0 : index
    %c0_20 = arith.constant 0 : index
    %40 = vector.load %arg5[%c0_19, %c0_20] : memref<128x256xbf16, #tpu.memory_space<vmem>>, vector<128x256xbf16>
    %cst_21 = arith.constant dense<0.000000e+00> : vector<8x256xf32>
    %41 = tpu.matmul %39, %40, %cst_21 {dimension_numbers = #tpu.dot_dimension_numbers<[1], [0], [0], [1], [0, 0, 1, 1], [], []>} : vector<8x128xbf16>, vector<128x256xbf16>, vector<8x256xf32> -> vector<8x256xf32>
    %42 = vector.broadcast %38 : vector<1x256xf32> to vector<8x256xf32>
    %43 = arith.addf %41, %42 : vector<8x256xf32>
    %44 = vector.extract_strided_slice %43 {offsets = [0, 0], sizes = [8, 128], strides = [1, 1]} : vector<8x256xf32> to vector<8x128xf32>
    %45 = vector.extract_strided_slice %43 {offsets = [0, 128], sizes = [8, 128], strides = [1, 1]} : vector<8x256xf32> to vector<8x128xf32>
    %c0_22 = arith.constant 0 : index
    %c0_23 = arith.constant 0 : index
    %46 = vector.load %arg1[%c0_22, %c0_23] : memref<8x128xf32, #tpu.memory_space<vmem>>, vector<8x128xf32>
    %cst_24 = arith.constant 5.000000e-01 : f32
    %47 = vector.broadcast %cst_24 : f32 to vector<8x128xf32>
    %48 = arith.mulf %47, %45 : vector<8x128xf32>
    %49 = math.exp %48 : vector<8x128xf32>
    %50 = arith.mulf %46, %49 : vector<8x128xf32>
    %51 = arith.addf %44, %50 : vector<8x128xf32>
    %c0_25 = arith.constant 0 : index
    %c0_26 = arith.constant 0 : index
    %52 = vector.load %arg9[%c0_25, %c0_26] : memref<4x128xf32, #tpu.memory_space<vmem>>, vector<1x128xf32>
    %53 = arith.truncf %51 : vector<8x128xf32> to vector<8x128xbf16>
    %c0_27 = arith.constant 0 : index
    %c0_28 = arith.constant 0 : index
    %54 = vector.load %arg7[%c0_27, %c0_28] : memref<128x128xbf16, #tpu.memory_space<vmem>>, vector<128x128xbf16>
    %cst_29 = arith.constant dense<0.000000e+00> : vector<8x128xf32>
    %55 = tpu.matmul %53, %54, %cst_29 {dimension_numbers = #tpu.dot_dimension_numbers<[1], [0], [0], [1], [0, 0, 1, 1], [], []>} : vector<8x128xbf16>, vector<128x128xbf16>, vector<8x128xf32> -> vector<8x128xf32>
    %56 = vector.broadcast %52 : vector<1x128xf32> to vector<8x128xf32>
    %57 = arith.addf %55, %56 : vector<8x128xf32>
    %c1_30 = arith.constant 1 : index
    %c0_31 = arith.constant 0 : index
    %58 = vector.load %arg9[%c1_30, %c0_31] : memref<4x128xf32, #tpu.memory_space<vmem>>, vector<1x128xf32>
    %c2_32 = arith.constant 2 : index
    %c0_33 = arith.constant 0 : index
    %59 = vector.load %arg9[%c2_32, %c0_33] : memref<4x128xf32, #tpu.memory_space<vmem>>, vector<1x128xf32>
    %cst_34 = arith.constant dense<0.000000e+00> : vector<128xf32>
    %60 = vector.multi_reduction <add>, %57, %cst_34 [0] : vector<8x128xf32> to vector<128xf32>
    %61 = vector.shape_cast %60 : vector<128xf32> to vector<1x128xf32>
    %cst_35 = arith.constant 1.250000e-01 : f32
    %62 = vector.broadcast %cst_35 : f32 to vector<1x128xf32>
    %63 = arith.mulf %61, %62 : vector<1x128xf32>
    %64 = vector.broadcast %63 : vector<1x128xf32> to vector<8x128xf32>
    %65 = arith.subf %57, %64 : vector<8x128xf32>
    %66 = arith.mulf %65, %65 : vector<8x128xf32>
    %cst_36 = arith.constant dense<0.000000e+00> : vector<128xf32>
    %67 = vector.multi_reduction <add>, %66, %cst_36 [0] : vector<8x128xf32> to vector<128xf32>
    %68 = vector.shape_cast %67 : vector<128xf32> to vector<1x128xf32>
    %cst_37 = arith.constant 1.250000e-01 : f32
    %69 = vector.broadcast %cst_37 : f32 to vector<1x128xf32>
    %70 = arith.mulf %68, %69 : vector<1x128xf32>
    %cst_38 = arith.constant 9.99999974E-6 : f32
    %71 = vector.broadcast %cst_38 : f32 to vector<1x128xf32>
    %72 = arith.addf %70, %71 : vector<1x128xf32>
    %73 = math.rsqrt %72 : vector<1x128xf32>
    %74 = arith.mulf %58, %73 : vector<1x128xf32>
    %75 = arith.mulf %63, %74 : vector<1x128xf32>
    %76 = arith.subf %59, %75 : vector<1x128xf32>
    %77 = vector.broadcast %74 : vector<1x128xf32> to vector<8x128xf32>
    %78 = arith.mulf %57, %77 : vector<8x128xf32>
    %79 = vector.broadcast %76 : vector<1x128xf32> to vector<8x128xf32>
    %80 = arith.addf %78, %79 : vector<8x128xf32>
    %cst_39 = arith.constant 0.000000e+00 : f32
    %81 = vector.broadcast %cst_39 : f32 to vector<8x128xf32>
    %82 = arith.maximumf %80, %81 : vector<8x128xf32>
    %c3_40 = arith.constant 3 : index
    %c0_41 = arith.constant 0 : index
    %83 = vector.load %arg9[%c3_40, %c0_41] : memref<4x128xf32, #tpu.memory_space<vmem>>, vector<1x128xf32>
    %84 = arith.truncf %82 : vector<8x128xf32> to vector<8x128xbf16>
    %c0_42 = arith.constant 0 : index
    %c0_43 = arith.constant 0 : index
    %85 = vector.load %arg8[%c0_42, %c0_43] : memref<128x128xbf16, #tpu.memory_space<vmem>>, vector<128x128xbf16>
    %cst_44 = arith.constant dense<0.000000e+00> : vector<8x128xf32>
    %86 = tpu.matmul %84, %85, %cst_44 {dimension_numbers = #tpu.dot_dimension_numbers<[1], [0], [0], [1], [0, 0, 1, 1], [], []>} : vector<8x128xbf16>, vector<128x128xbf16>, vector<8x128xf32> -> vector<8x128xf32>
    %87 = vector.broadcast %83 : vector<1x128xf32> to vector<8x128xf32>
    %88 = arith.addf %86, %87 : vector<8x128xf32>
    %c0_45 = arith.constant 0 : index
    %c0_46 = arith.constant 0 : index
    %89 = vector.load %arg10[%c0_45, %c0_46] : memref<8x128xf32, #tpu.memory_space<vmem>>, vector<8x128xf32>
    tpu.vector_store %arg10[%c0_45, %c0_46], %88 {strides = array<i32>} : memref<8x128xf32, #tpu.memory_space<vmem>>, vector<8x128xf32>,
    %c0_47 = arith.constant 0 : index
    %c0_48 = arith.constant 0 : index
    %90 = vector.load %arg11[%c0_47, %c0_48] : memref<8x128xf32, #tpu.memory_space<vmem>>, vector<8x128xf32>
    tpu.vector_store %arg11[%c0_47, %c0_48], %44 {strides = array<i32>} : memref<8x128xf32, #tpu.memory_space<vmem>>, vector<8x128xf32>,
    %c0_49 = arith.constant 0 : index
    %c0_50 = arith.constant 0 : index
    %91 = vector.load %arg12[%c0_49, %c0_50] : memref<8x128xf32, #tpu.memory_space<vmem>>, vector<8x128xf32>
    tpu.vector_store %arg12[%c0_49, %c0_50], %45 {strides = array<i32>} : memref<8x128xf32, #tpu.memory_space<vmem>>, vector<8x128xf32>,
    return
  }
}

</mosaic_0001>

<bundles_post_ra>
// kernel: tpu_custom_call.1
= control target key start
LH: loop header
LB: loop body
LE: loop exit
PB: predicated region body
PF: predicated region fallthrough
CT: control target
= control target key end

     0   :  { %18 = vsyncpa [#allocation3], 0  ;;  %s1437_s0 = inlined_call_operand.hbm [shape: f32[8,128], index: 0, kind: input, shape index: {}]   ;;  %s1438_s1 = inlined_call_operand.hbm [shape: f32[8,128], index: 1, kind: input, shape index: {}]   ;;  %s1439_s2 = inlined_call_operand.hbm [shape: bf16[128,128], index: 2, kind: input, shape index: {}]   ;;  %s1440_s3 = inlined_call_operand.hbm [shape: bf16[128,128], index: 3, kind: input, shape index: {}]   ;;  %s1441_s4 = inlined_call_operand.hbm [shape: f32[4,128], index: 4, kind: input, shape index: {}]   ;;  %s1442_s5 = inlined_call_operand.hbm [shape: bf16[128,256], index: 5, kind: input, shape index: {}]   ;;  %s1443_s6 = inlined_call_operand.vmem [shape: f32[1,256], index: 6, kind: input, shape index: {}]   ;;  %s1444_s7 = inlined_call_operand.hbm [shape: bf16[128,128], index: 7, kind: input, shape index: {}]   ;;  %s1445_s8 = inlined_call_operand.hbm [shape: bf16[128,128], index: 8, kind: input, shape index: {}]   ;;  %s1446_s9 = inlined_call_operand.vmem [shape: f32[4,128], index: 9, kind: input, shape index: {}]   ;;  %s1447_s10 = inlined_call_operand.hbm [shape: f32[8,128], index: 10, kind: output, shape index: {0}]   ;;  %s1448_s11 = inlined_call_operand.hbm [shape: f32[8,128], index: 11, kind: output, shape index: {1}]   ;;  %s1449_s12 = inlined_call_operand.hbm [shape: f32[8,128], index: 12, kind: output, shape index: {2}]  }
   0x1   :  { %19 = vsyncpa [#allocation6], 0 }
   0x2   :  { %20 = vsyncpa [#allocation9], 0 }
   0x3   :  { %21 = vsyncpa [#allocation12], 0 }
   0x4   :  { %22 = vsyncpa [#allocation15], 0 }
   0x5   :  { %23 = vsyncpa [#allocation4], 0  ;;  %s41_s23 = sshll.u32 %s1438_s1, 4  ;;  %s42_s23 = int_to_ptr.hbm [resolvable:$true] %s41_s23 }
   0x6   :  { %24 = vsyncpa [#allocation18], 0  ;;  %s1287_s24 = smov [#allocation5]   ;;  %s64_s28 = sshll.u32 %s1440_s3, 4  ;;  %s65_s28 = int_to_ptr.hbm [resolvable:$true] %s64_s28 }
   0x7   :  { %s43_s25 = sshll.u32 %s1287_s24, 4  ;;  %s1288_s29 = smov [#allocation8]   ;;  %s44_s25 = int_to_ptr.vmem [resolvable:$true] %s43_s25 }
   0x8   :  { %46 = dma.hbm_to_vmem [thread:$0]  %s42_s23, 128, %s44_s25, [#allocation6]  }
   0x9   :  { %s66_s30 = sshll.u32 %s1288_s29, 4  ;;  %s88_s15 = sshll.u32 %s1442_s5, 4  ;;  %s67_s30 = int_to_ptr.vmem [resolvable:$true] %s66_s30  ;;  %s89_s15 = int_to_ptr.hbm [resolvable:$true] %s88_s15 }
   0xa   :  { %s1289_s1 = smov 64   ;;  %s1290_s16 = smov 4  }
   0xb   :  { %72 = dma.hbm_to_vmem [thread:$0]  %s65_s28, 1024, %s67_s30, [#allocation9], %s1289_s1, %s1289_s1, %s1290_s16  }
   0xc   :  { %s1291_s17 = smov [#allocation11]   ;;  %s30_s20 = sshll.u32 %s1437_s0, 4  ;;  %s31_s20 = int_to_ptr.hbm [resolvable:$true] %s30_s20 }
   0xd   :  { %s90_s18 = sshll.u32 %s1291_s17, 4  ;;  %s1292_s21 = smov 128   ;;  %s91_s18 = int_to_ptr.vmem [resolvable:$true] %s90_s18 }
   0xe   :  { %s1293_s22 = smov 8   ;;  %s1294_s5 = smov [#allocation2]  }
   0xf   :  { %96 = dma.hbm_to_vmem [thread:$0]  %s89_s15, 2048, %s91_s18, [#allocation12], %s1292_s21, %s1292_s21, %s1293_s22  }
  0x10   :  { %s32_s23 = sshll.u32 %s1294_s5, 4  ;;  %s51_s26 = sshll.u32 %s1439_s2, 4  ;;  %s33_s23 = int_to_ptr.vmem [resolvable:$true] %s32_s23  ;;  %s52_s26 = int_to_ptr.hbm [resolvable:$true] %s51_s26 }
  0x11   :  { %35 = dma.hbm_to_vmem [thread:$0]  %s31_s20, 128, %s33_s23, [#allocation3]  }
  0x12   :  { %s78_s29 = sshll.u32 %s1441_s4, 4  ;;  %s1295_s30 = smov [#allocation7]   ;;  %s79_s29 = int_to_ptr.hbm [resolvable:$true] %s78_s29 }
  0x13   :  { %s53_s13 = sshll.u32 %s1295_s30, 4  ;;  %s1296_s0 = smov [#allocation10]   ;;  %s54_s13 = int_to_ptr.vmem [resolvable:$true] %s53_s13 }
  0x14   :  { %59 = dma.hbm_to_vmem [thread:$0]  %s52_s26, 1024, %s54_s13, [#allocation6], %s1289_s1, %s1289_s1, %s1290_s16  }
  0x15   :  { %s80_s14 = sshll.u32 %s1296_s0, 4  ;;  %s103_s2 = sshll.u32 %s1444_s7, 4  ;;  %s81_s14 = int_to_ptr.vmem [resolvable:$true] %s80_s14  ;;  %s104_s2 = int_to_ptr.hbm [resolvable:$true] %s103_s2 }
  0x16   :  { %83 = dma.hbm_to_vmem [thread:$0]  %s79_s29, 64, %s81_s14, [#allocation9]  }
  0x17   :  { %s116_s4 = sshll.u32 %s1445_s8, 4  ;;  %s1297_s3 = smov [#allocation13]   ;;  %s117_s4 = int_to_ptr.hbm [resolvable:$true] %s116_s4 }
  0x18   :  { %s105_s20 = sshll.u32 %s1297_s3, 4  ;;  %s1298_s21 = smov [#allocation14]   ;;  %s106_s20 = int_to_ptr.vmem [resolvable:$true] %s105_s20 }
  0x19   :  { %111 = dma.hbm_to_vmem [thread:$0]  %s104_s2, 1024, %s106_s20, [#allocation12], %s1289_s1, %s1289_s1, %s1290_s16  }
  0x1a   :  { %s118_s22 = sshll.u32 %s1298_s21, 4  ;;  %s119_s22 = int_to_ptr.vmem [resolvable:$true] %s118_s22 }
  0x1b   :  { %124 = dma.hbm_to_vmem [thread:$0]  %s117_s4, 1024, %s119_s22, [#allocation15], %s1289_s1, %s1289_s1, %s1290_s16  }
  0x1c   :  { %1273 = dma.done.wait [#allocation3], 128  }
  0x1d   :  { %1274 = vsyncadd [#allocation3], 4294967168 }
  0x1e   :  { %1275 = dma.done.wait [#allocation6], 1152  }
  0x1f   :  { %1276 = vsyncadd [#allocation6], 4294966144 }
  0x20   :  { %1277 = dma.done.wait [#allocation9], 1088  }
  0x21   :  { %1278 = vsyncadd [#allocation9], 4294966208 }
  0x22   :  { %1279 = dma.done.wait [#allocation12], 3072  }
  0x23   :  { %1280 = vsyncadd [#allocation12], 4294964224 }
  0x24   :  { %1281 = dma.done.wait [#allocation15], 1024  }
  0x25   :  { %1282 = vsyncadd [#allocation15], 4294966272  ;;  %v943_v0 = vld [vmem:[#allocation7 + $0x38] sm:$0xff]  ;;  %v942_v1 = vld [vmem:[#allocation7 + $0x30] sm:$0xff]  ;;  %s710_s27 = sshll.u32 %s1448_s11, 4  ;;  %s1299_s28 = smov [#allocation17]   ;;  %s711_s27 = int_to_ptr.hbm [resolvable:$true] %s710_s27 }
  0x26   :  { %227 = vmatpush.bf16.msra.mxu0 %v943_v0  ;;  %v941_v2 = vld [vmem:[#allocation7 + $0x28] sm:$0xff]  ;;  %v940_v3 = vld [vmem:[#allocation7 + $0x20] sm:$0xff]  ;;  %v939_v4 = vld [vmem:[#allocation7 + $0x18] sm:$0xff]  ;;  %s708_s29 = sshll.u32 %s1299_s28, 4  ;;  %s1300_s30 = smov [#allocation19]   ;;  %s709_s29 = int_to_ptr.vmem [resolvable:$true] %s708_s29 }
  0x27   :  { %v938_v5 = vld [vmem:[#allocation7 + $0x10] sm:$0xff]  ;;  %v937_v6 = vld [vmem:[#allocation7 + $0x8] sm:$0xff]  ;;  %v936_v7 = vld [vmem:[#allocation7] sm:$0xff]  ;;  %s719_s13 = sshll.u32 %s1300_s30, 4  ;;  %s721_s15 = sshll.u32 %s1449_s12, 4  ;;  %s720_s13 = int_to_ptr.vmem [resolvable:$true] %s719_s13  ;;  %s722_s15 = int_to_ptr.hbm [resolvable:$true] %s721_s15 }
  0x28   :  { %v159_v8 = vld [vmem:[#allocation2] sm:$0xff]  ;;  %v999_v10 = vld [vmem:[#allocation10] ss:$0 sm:$0xff]  ;;  %v951_v14 = vld [vmem:[#allocation8 + $0x38] sm:$0xff]  ;;  %s1301_s18 = smov [#allocation16]   ;;  %s699_s3 = sshll.u32 %s1447_s10, 4  ;;  %s700_s3 = int_to_ptr.hbm [resolvable:$true] %s699_s3 }
  0x29   :  { %v161_v9 = vpack.c.bf16 %v159_v8, %v159_v8  ;;  %344 = vmatpush.bf16.msra.mxu1 %v951_v14  ;;  %v950_v16 = vld [vmem:[#allocation8 + $0x30] sm:$0xff]  ;;  %v949_v20 = vld [vmem:[#allocation8 + $0x28] sm:$0xff]  ;;  %v948_v23 = vld [vmem:[#allocation8 + $0x20] sm:$0xff]  ;;  %s697_s11 = sshll.u32 %s1301_s18, 4  ;;  %s698_s11 = int_to_ptr.vmem [resolvable:$true] %s697_s11 }
  0x2a   :  { %228 = vmatpush.bf16.msra.mxu0 %v942_v1  ;;  %v947_v26 = vld [vmem:[#allocation8 + $0x18] sm:$0xff]  ;;  %v946_v29 = vld [vmem:[#allocation8 + $0x10] sm:$0xff]  ;;  %v945_v32 = vld [vmem:[#allocation8 + $0x8] sm:$0xff] }
  0x2b   :  { %v944_v35 = vld [vmem:[#allocation8] sm:$0xff]  ;;  %v866_v39 = vld [vmem:[#allocation11 + $0x70] sm:$0xf]  ;;  %v967_v40 = vld [vmem:[#allocation11 + $0x74] sm:$0xf0] }
  0x2c   :  { %v966_v41 = vld [vmem:[#allocation11 + $0x74] sm:$0xf]  ;;  %v867_v42 = vor.u32 %v967_v40, %v866_v39  ;;  %v868_v43 = vld [vmem:[#allocation11 + $0x78] sm:$0xf0]  ;;  %v858_v44 = vld [vmem:[#allocation11 + $0x60] sm:$0xf] }
  0x2d   :  { %345 = vmatpush.bf16.msra.mxu1 %v950_v16  ;;  %v965_v45 = vld [vmem:[#allocation11 + $0x64] sm:$0xf0]  ;;  %v871_v46 = vor.u32 %v966_v41, %v868_v43  ;;  %v964_v47 = vld [vmem:[#allocation11 + $0x64] sm:$0xf]  ;;  %v860_v48 = vld [vmem:[#allocation11 + $0x68] sm:$0xf0] }
  0x2e   :  { %229 = vmatpush.bf16.msra.mxu0 %v941_v2  ;;  %460 = vmatpush.bf16.msra.mxu2 %v867_v42  ;;  %v859_v49 = vor.u32 %v965_v45, %v858_v44  ;;  %v863_v50 = vor.u32 %v964_v47, %v860_v48  ;;  %v850_v51 = vld [vmem:[#allocation11 + $0x50] sm:$0xf]  ;;  %v963_v52 = vld [vmem:[#allocation11 + $0x54] sm:$0xf0]  ;;  %v962_v53 = vld [vmem:[#allocation11 + $0x54] sm:$0xf] }
  0x2f   :  { %473 = vmatpush.bf16.msra.mxu3 %v871_v46  ;;  %v852_v54 = vld [vmem:[#allocation11 + $0x58] sm:$0xf0]  ;;  %v851_v57 = vor.u32 %v963_v52, %v850_v51  ;;  %v842_v59 = vld [vmem:[#allocation11 + $0x40] sm:$0xf]  ;;  %v961_v60 = vld [vmem:[#allocation11 + $0x44] sm:$0xf0] }
  0x30   :  { %v855_v58 = vor.u32 %v962_v53, %v852_v54  ;;  %v960_v62 = vld [vmem:[#allocation11 + $0x44] sm:$0xf]  ;;  %v844_v63 = vld [vmem:[#allocation11 + $0x48] sm:$0xf0]  ;;  %v843_v1 = vor.u32 %v961_v60, %v842_v59  ;;  %v240_v8 = vld [vmem:[#allocation10 + $0x1] sm:$0x1] }
  0x31   :  { %346 = vmatpush.bf16.msra.mxu1 %v949_v20  ;;  %v847_v2 = vor.u32 %v960_v62, %v844_v63  ;;  %v957_v14 = vld [vmem:[#allocation11 + $0x24] sm:$0xf0]  ;;  %v956_v16 = vld [vmem:[#allocation11 + $0x24] sm:$0xf]  ;;  %v812_v40 = vld [vmem:[#allocation11 + $0x8] sm:$0xf0] }
  0x32   :  { %230 = vmatpush.bf16.msra.mxu0 %v940_v3  ;;  %461 = vmatpush.bf16.msra.mxu2 %v859_v49  ;;  %v834_v3 = vld [vmem:[#allocation11 + $0x30] sm:$0xf]  ;;  %v975_v42 = vld [vmem:[#allocation13 + $0x38] sm:$0xff]  ;;  %v973_v43 = vld [vmem:[#allocation13 + $0x28] sm:$0xff] }
  0x33   :  { %474 = vmatpush.bf16.msra.mxu3 %v863_v50  ;;  %v1000_v44 = vld [vmem:[#allocation10 + $0x3] ss:$0 sm:$0xff]  ;;  %v972_v49 = vld [vmem:[#allocation13 + $0x20] sm:$0xff]  ;;  %v970_v51 = vld [vmem:[#allocation13 + $0x10] sm:$0xff] }
  0x34   :  { %v971_v50 = vld [vmem:[#allocation13 + $0x18] sm:$0xff]  ;;  %v969_v52 = vld [vmem:[#allocation13 + $0x8] sm:$0xff]  ;;  %v968_v53 = vld [vmem:[#allocation13] sm:$0xff] }
  0x35   :  { %347 = vmatpush.bf16.msra.mxu1 %v948_v23  ;;  %v357_v54 = vld [vmem:[%s1443_s6] sm:$0x3] }
  0x36   :  { %231 = vmatpush.bf16.msra.mxu0 %v939_v4  ;;  %462 = vmatpush.bf16.msra.mxu2 %v851_v57  ;;  %v959_v4 = vld [vmem:[#allocation11 + $0x34] sm:$0xf0] }
  0x37   :  { %475 = vmatpush.bf16.msra.mxu3 %v855_v58 }
  0x39   :  { %348 = vmatpush.bf16.msra.mxu1 %v947_v26  ;;  %v955_v26 = vld [vmem:[#allocation11 + $0x14] sm:$0xf0] }
  0x3a   :  { %232 = vmatpush.bf16.msra.mxu0 %v938_v5  ;;  %463 = vmatpush.bf16.msra.mxu2 %v843_v1  ;;  %v486_v1 = vld [vmem:[#allocation5] sm:$0xff] }
  0x3b   :  { %476 = vmatpush.bf16.msra.mxu3 %v847_v2 }
  0x3d   :  { %349 = vmatpush.bf16.msra.mxu1 %v946_v29 }
  0x3e   :  { %233 = vmatpush.bf16.msra.mxu0 %v937_v6  ;;  %v958_v6 = vld [vmem:[#allocation11 + $0x34] sm:$0xf] }
  0x41   :  { %350 = vmatpush.bf16.msra.mxu1 %v945_v32 }
  0x42   :  { %234 = vmatpush.bf16.msra.mxu0 %v936_v7  ;;  %v836_v7 = vld [vmem:[#allocation11 + $0x38] sm:$0xf0] }
  0x45   :  { %235 = vmatmul.bf16.vlgmr.msra.gmra.mxu0 %v161_v9  ;;  %351 = vmatpush.bf16.msra.mxu1 %v944_v35 }
  0x46   :  { %559 = vmatpush.bf16.msrb.mxu0 %v975_v42 }
  0xc2   :  { %v236_v11 = vpop.f32.mrf.mxu0 }
  0xc3   :  { %v1403_v12 = vadd.f32 %v999_v10, %v236_v11  ;;  %v835_v10 = vor.u32 %v959_v4, %v834_v3  ;;  %v839_v11 = vor.u32 %v958_v6, %v836_v7  ;;  %v1001_v6 = vld [vmem:[%s1446_s9] ss:$0 sm:$0xff] }
  0xc5   :  { %v242_v13 = vrot.slane %v1403_v12, 4  ;;  %464 = vmatpush.bf16.msra.mxu2 %v835_v10  ;;  %477 = vmatpush.bf16.msra.mxu3 %v839_v11  ;;  %v983_v11 = vld [vmem:[#allocation14 + $0x38] sm:$0xff] }
  0xc6   :  { %676 = vmatpush.bf16.msrb.mxu1 %v983_v11 }
  0xc7   :  { %v243_v15 = vadd.f32 %v242_v13, %v1403_v12  ;;  %v826_v13 = vld [vmem:[#allocation11 + $0x20] sm:$0xf] }
  0xc8   :  { %v827_v20 = vor.u32 %v957_v14, %v826_v13 }
  0xc9   :  { %v244_v17 = vrot.slane %v243_v15, 2 }
  0xca   :  { %v238_v18 = vpop.f32.mrf.mxu0  ;;  %465 = vmatpush.bf16.msra.mxu2 %v827_v20 }
  0xcb   :  { %v245_v19 = vadd.f32 %v244_v17, %v243_v15  ;;  %v828_v17 = vld [vmem:[#allocation11 + $0x28] sm:$0xf0] }
  0xcc   :  { %v831_v23 = vor.u32 %v956_v16, %v828_v17  ;;  %v982_v16 = vld [vmem:[#allocation14 + $0x30] sm:$0xff] }
  0xcd   :  { %v246_v21 = vrot.slane %v245_v19, 1  ;;  %677 = vmatpush.bf16.msrb.mxu1 %v982_v16 }
  0xce   :  { %478 = vmatpush.bf16.msra.mxu3 %v831_v23 }
  0xcf   :  { %v247_v22 = vadd.f32 %v246_v21, %v245_v19  ;;  %v241_v19 = vld [vmem:[#allocation10 + $0x2] sm:$0x1] }
  0xd1   :  { %v1407_v24 = vmul.f32 0.125, %v247_v22 }
  0xd3   :  { %v249_v25 = vsub.f32 %v1403_v12, %v1407_v24 }
  0xd5   :  { %v250_v27 = vmul.f32 %v249_v25, %v249_v25  ;;  %v818_v25 = vld [vmem:[#allocation11 + $0x10] sm:$0xf] }
  0xd7   :  { %v251_v28 = vrot.slane %v250_v27, 4 }
  0xd9   :  { %v252_v30 = vadd.f32 %v251_v28, %v250_v27  ;;  %v954_v27 = vld [vmem:[#allocation11 + $0x14] sm:$0xf]  ;;  %v820_v28 = vld [vmem:[#allocation11 + $0x18] sm:$0xf0] }
  0xdb   :  { %v253_v31 = vrot.slane %v252_v30, 2 }
  0xdd   :  { %v254_v33 = vadd.f32 %v253_v31, %v252_v30  ;;  %v819_v30 = vor.u32 %v955_v26, %v818_v25  ;;  %v979_v25 = vld [vmem:[#allocation14 + $0x18] sm:$0xff] }
  0xdf   :  { %v255_v34 = vrot.slane %v254_v33, 1  ;;  %466 = vmatpush.bf16.msra.mxu2 %v819_v30 }
  0xe1   :  { %v256_v36 = vadd.f32 %v255_v34, %v254_v33  ;;  %v823_v33 = vor.u32 %v954_v27, %v820_v28  ;;  %v978_v28 = vld [vmem:[#allocation14 + $0x10] sm:$0xff] }
  0xe3   :  { %v257_v37 = vmul.f32 0.125, %v256_v36  ;;  %479 = vmatpush.bf16.msra.mxu3 %v823_v33  ;;  %v810_v36 = vld [vmem:[#allocation11] sm:$0xf] }
  0xe5   :  { %v258_v38 = vadd.f32 1e-05, %v257_v37  ;;  %v953_v37 = vld [vmem:[#allocation11 + $0x4] sm:$0xf0] }
  0xe6   :  { %v811_v39 = vor.u32 %v953_v37, %v810_v36 }
  0xe7   :  { %1003 = vrsqrt.f32 %v258_v38  ;;  %vm265_vm1 = vweird.f32 %v258_v38 }
  0xe8   :  { %467 = vmatpush.bf16.msra.mxu2 %v811_v39 }
  0xed   :  { %v1004_v55 = vpop.eup %1003 }
  0xee   :  { %v260_v56 = vmul.f32 %v1004_v55, %v258_v38  ;;  %vm266_vm0 = vweird.f32 %v1004_v55  ;;  %v952_v38 = vld [vmem:[#allocation11 + $0x4] sm:$0xf] }
  0xef   :  { %vm267_vm2 = vmor %vm265_vm1, %vm266_vm0  ;;  %v815_v41 = vor.u32 %v952_v38, %v812_v40 }
  0xf0   :  { %v261_v61 = vmul.f32 %v1004_v55, %v260_v56  ;;  %v377_v56 = vperm.slane %v357_v54, 1 }
  0xf1   :  { %480 = vmatpush.bf16.msra.mxu3 %v815_v41  ;;  %v572_v41 = vld [vmem:[%s1446_s9 + $0x1] sm:$0x1] }
  0xf2   :  { %v262_v0 = vmul.f32 0.5, %v261_v61 }
  0xf4   :  { %v263_v5 = vsub.f32 1.5, %v262_v0 }
  0xf6   :  { %v264_v9 = vmul.f32 %v1004_v55, %v263_v5 }
  0xf8   :  { %v268_v15 = vsel %vm267_vm2, %v1004_v55, %v264_v9  ;;  %v376_v55 = vperm.slane %v357_v54, 0 }
  0xf9   :  { %v269_v18 = vmul.f32 %v268_v15, %v240_v8 }
  0xfb   :  { %v270_v21 = vmul.f32 %v269_v18, %v1407_v24  ;;  %v272_v22 = vperm.slane %v269_v18, 0  ;;  %v981_v18 = vld [vmem:[#allocation14 + $0x28] sm:$0xff] }
  0xfc   :  { %678 = vmatpush.bf16.msrb.mxu1 %v981_v18 }
  0xfd   :  { %v271_v29 = vsub.f32 %v241_v19, %v270_v21  ;;  %v273_v31 = vmul.f32 %v272_v22, %v1403_v12  ;;  %v974_v12 = vld [vmem:[#allocation13 + $0x30] sm:$0xff]  ;;  %v980_v21 = vld [vmem:[#allocation14 + $0x20] sm:$0xff] }
  0xfe   :  { %560 = vmatpush.bf16.msrb.mxu0 %v974_v12 }
  0xff   :  { %v274_v32 = vperm.slane %v271_v29, 0 }
 0x100   :  { %679 = vmatpush.bf16.msrb.mxu1 %v980_v21 }
 0x101   :  { %v275_v34 = vadd.f32 %v274_v32, %v273_v31  ;;  %v977_v31 = vld [vmem:[#allocation14 + $0x8] sm:$0xff] }
 0x102   :  { %561 = vmatpush.bf16.msrb.mxu0 %v973_v43 }
 0x103   :  { %v276_v35 = vmax.f32 %v275_v34, 0.0  ;;  %v976_v34 = vld [vmem:[#allocation14] sm:$0xff] }
 0x104   :  { %680 = vmatpush.bf16.msrb.mxu1 %v979_v25 }
 0x105   :  { %v278_v24 = vpack.c.bf16 %v276_v35, %v276_v35 }
 0x106   :  { %562 = vmatpush.bf16.msrb.mxu0 %v972_v49 }
 0x107   :  { %352 = vmatmul.bf16.vlgmr.msra.gmra.mxu1 %v278_v24 }
 0x108   :  { %681 = vmatpush.bf16.msrb.mxu1 %v978_v28 }
 0x10a   :  { %563 = vmatpush.bf16.msrb.mxu0 %v971_v50 }
 0x10c   :  { %682 = vmatpush.bf16.msrb.mxu1 %v977_v31 }
 0x10e   :  { %564 = vmatpush.bf16.msrb.mxu0 %v970_v51 }
 0x110   :  { %683 = vmatpush.bf16.msrb.mxu1 %v976_v34 }
 0x112   :  { %565 = vmatpush.bf16.msrb.mxu0 %v969_v52 }
 0x116   :  { %566 = vmatpush.bf16.msrb.mxu0 %v968_v53  ;;  %v1002_v53 = vld [vmem:[%s1446_s9 + $0x3] ss:$0 sm:$0xff] }
 0x184   :  { %v353_v45 = vpop.f32.mrf.mxu1 }
 0x185   :  { %v354_v46 = vadd.f32 %v1000_v44, %v353_v45  ;;  %v573_v44 = vld [vmem:[%s1446_s9 + $0x2] sm:$0x1] }
 0x187   :  { %v358_v47 = vpack.c.bf16 %v354_v46, %v354_v46 }
 0x189   :  { %468 = vmatmul.bf16.vlgmr.msra.gmra.mxu2 %v358_v47  ;;  %481 = vmatmul.bf16.vlgmr.msra.gmra.mxu3 %v358_v47 }
 0x18c   :  { %v355_v48 = vpop.f32.mrf.mxu1 }
 0x20c   :  { %v469_v57 = vpop.f32.mrf.mxu2  ;;  %v482_v58 = vpop.f32.mrf.mxu3 }
 0x20d   :  { %v470_v59 = vadd.f32 %v469_v57, %v376_v55  ;;  %v483_v60 = vadd.f32 %v482_v58, %v377_v56 }
 0x20f   :  { %690 = vst [vmem:[#allocation17] sm:$0xff] %v470_v59  ;;  %v487_v61 = vmul.f32 0.5, %v483_v60 }
 0x210   :  { %691 = vst [vmem:[#allocation19] sm:$0xff] %v483_v60  ;;  %713 = dma.vmem_to_hbm [thread:$0]  %s709_s29, 128, %s711_s27, [#allocation18]  }
 0x211   :  { %v488_v62 = vmul.f32 1.442695, %v487_v61  ;;  %724 = dma.vmem_to_hbm [thread:$0]  %s720_s13, 128, %s722_s15, [#allocation18]  }
 0x213   :  { %1005 = vpow2.f32 %v488_v62 }
 0x214   :  { %v471_v63 = vpop.f32.mrf.mxu2  ;;  %v484_v0 = vpop.f32.mrf.mxu3 }
 0x219   :  { %v1006_v2 = vpop.eup %1005 }
 0x21a   :  { %v490_v3 = vmul.f32 %v1006_v2, %v486_v1 }
 0x21c   :  { %v491_v4 = vadd.f32 %v490_v3, %v470_v59 }
 0x21e   :  { %v493_v5 = vpack.c.bf16 %v491_v4, %v491_v4 }
 0x220   :  { %567 = vmatmul.bf16.vlgmr.msrb.gmra.mxu0 %v493_v5 }
 0x29d   :  { %v568_v7 = vpop.f32.mrf.mxu0 }
 0x29e   :  { %v569_v8 = vadd.f32 %v1001_v6, %v568_v7 }
 0x2a0   :  { %v574_v9 = vrot.slane %v569_v8, 4 }
 0x2a2   :  { %v575_v10 = vadd.f32 %v574_v9, %v569_v8 }
 0x2a4   :  { %v576_v13 = vrot.slane %v575_v10, 2 }
 0x2a5   :  { %v570_v14 = vpop.f32.mrf.mxu0 }
 0x2a6   :  { %v577_v15 = vadd.f32 %v576_v13, %v575_v10 }
 0x2a8   :  { %v578_v17 = vrot.slane %v577_v15, 1 }
 0x2aa   :  { %v579_v19 = vadd.f32 %v578_v17, %v577_v15 }
 0x2ac   :  { %v580_v20 = vmul.f32 0.125, %v579_v19 }
 0x2ae   :  { %v581_v22 = vsub.f32 %v569_v8, %v580_v20 }
 0x2b0   :  { %v582_v23 = vmul.f32 %v581_v22, %v581_v22 }
 0x2b2   :  { %v583_v26 = vrot.slane %v582_v23, 4 }
 0x2b4   :  { %v584_v27 = vadd.f32 %v583_v26, %v582_v23 }
 0x2b6   :  { %v585_v29 = vrot.slane %v584_v27, 2 }
 0x2b8   :  { %v586_v30 = vadd.f32 %v585_v29, %v584_v27 }
 0x2ba   :  { %v587_v32 = vrot.slane %v586_v30, 1 }
 0x2bc   :  { %v588_v33 = vadd.f32 %v587_v32, %v586_v30 }
 0x2be   :  { %v589_v35 = vmul.f32 0.125, %v588_v33 }
 0x2c0   :  { %v590_v24 = vadd.f32 1e-05, %v589_v35 }
 0x2c2   :  { %1007 = vrsqrt.f32 %v590_v24  ;;  %vm597_vm4 = vweird.f32 %v590_v24 }
 0x2c8   :  { %v1008_v36 = vpop.eup %1007 }
 0x2c9   :  { %v592_v37 = vmul.f32 %v1008_v36, %v590_v24  ;;  %vm598_vm3 = vweird.f32 %v1008_v36 }
 0x2ca   :  { %vm599_vm5 = vmor %vm597_vm4, %vm598_vm3 }
 0x2cb   :  { %v593_v38 = vmul.f32 %v1008_v36, %v592_v37 }
 0x2cd   :  { %v594_v39 = vmul.f32 0.5, %v593_v38 }
 0x2cf   :  { %v595_v40 = vsub.f32 1.5, %v594_v39 }
 0x2d1   :  { %v596_v42 = vmul.f32 %v1008_v36, %v595_v40 }
 0x2d3   :  { %v600_v12 = vsel %vm599_vm5, %v1008_v36, %v596_v42 }
 0x2d4   :  { %v601_v43 = vmul.f32 %v600_v12, %v572_v41 }
 0x2d6   :  { %v602_v45 = vmul.f32 %v601_v43, %v580_v20  ;;  %v604_v46 = vperm.slane %v601_v43, 0 }
 0x2d8   :  { %v603_v47 = vsub.f32 %v573_v44, %v602_v45  ;;  %v605_v48 = vmul.f32 %v604_v46, %v569_v8 }
 0x2da   :  { %v606_v49 = vperm.slane %v603_v47, 0 }
 0x2dc   :  { %v607_v50 = vadd.f32 %v606_v49, %v605_v48 }
 0x2de   :  { %v608_v51 = vmax.f32 %v607_v50, 0.0 }
 0x2e0   :  { %v610_v52 = vpack.c.bf16 %v608_v51, %v608_v51 }
 0x2e2   :  { %684 = vmatmul.bf16.vlgmr.msrb.gmra.mxu1 %v610_v52 }
 0x35f   :  { %v685_v54 = vpop.f32.mrf.mxu1 }
 0x360   :  { %v686_v55 = vadd.f32 %v1002_v53, %v685_v54 }
 0x362   :  { %689 = vst [vmem:[#allocation16] sm:$0xff] %v686_v55 }
 0x363   :  { %702 = dma.vmem_to_hbm [thread:$0]  %s698_s11, 128, %s700_s3, [#allocation4]  }
 0x367   :  { %v687_v56 = vpop.f32.mrf.mxu1 }
 0x368   :  { %1283 = dma.done.wait [#allocation4], 128  }
 0x369   :  { %1284 = vsyncadd [#allocation4], 4294967168 }
 0x36a   :  { %1285 = dma.done.wait [#allocation18], 256  }
 0x36b   :  { %1286 = vsyncadd [#allocation18], 4294967040 }
 0x36c   :  { %737 = vsyncpa [#allocation3], 1 }
 0x36d   :  { %738 = vsyncpa [#allocation6], 1 }
 0x36e   :  { %739 = vsyncpa [#allocation9], 1 }
 0x36f   :  { %740 = vsyncpa [#allocation12], 1 }
 0x370   :  { %741 = vsyncpa [#allocation15], 1 }
 0x371   :  { %742 = vsyncpa [#allocation4], 1 }
 0x372   :  { %743 = vsyncpa [#allocation18], 1 }

</bundles_post_ra>
